<compile_context>
chip_gen: v6e
topology: v6e:2x2x1
jax: 0.10.0
libtpu: 0.0.40
codegen_flags: <defaults>
</compile_context>

<pallas_src>
import jax
import jax.numpy as jnp
from jax import lax
from jax.experimental import pallas as pl
from jax.experimental.pallas import tpu as pltpu

NEG_SLOPE = 0.01
BN_EPS = 1e-5
LANE = 128


def residual_linear_block_kernel(xk_ref, w_ref, xres_ref, b_ref, g_ref, be_ref,
                                 o_ref, acc_ref):
    k = pl.program_id(1)

    @pl.when(k == 0)
    def _():
        # Initialize the accumulator with residual + bias (f32).
        acc_ref[...] = (xres_ref[...].astype(jnp.float32)
                        + b_ref[...].astype(jnp.float32))

    # Linear partial product on this K tile: x[N, tk] @ W[tn, tk]^T -> [N, tn].
    # Contract on W's second dim directly (torch layout), no transpose needed.
    acc_ref[...] += lax.dot_general(
        xk_ref[...], w_ref[...],
        dimension_numbers=(((1,), (1,)), ((), ())),
        preferred_element_type=jnp.float32)

    @pl.when(k == pl.num_programs(1) - 1)
    def _():
        # LeakyReLU (negative_slope = 0.01): max(h, 0.01*h).
        h = acc_ref[...]
        h = jnp.maximum(h, NEG_SLOPE * h)

        # BatchNorm1d training-mode statistics over the batch axis (biased var).
        n = h.shape[0]
        inv_n = 1.0 / n
        mean = jnp.sum(h, axis=0, keepdims=True) * inv_n            # [1, tn]
        mean_sq = jnp.sum(h * h, axis=0, keepdims=True) * inv_n     # [1, tn]
        var = mean_sq - mean * mean
        inv_std = lax.rsqrt(var + BN_EPS)                           # EUP

        # Fold the affine: only one [N, tn] FMA touches the big tile.
        scale = g_ref[...].astype(jnp.float32) * inv_std            # [1, tn]
        shift = be_ref[...].astype(jnp.float32) - mean * scale      # [1, tn]
        o_ref[...] = (h * scale + shift).astype(o_ref.dtype)


def _pad_to(a, target, axis):
    pad = target - a.shape[axis]
    if pad == 0:
        return a
    widths = [(0, 0)] * a.ndim
    widths[axis] = (0, pad)
    return jnp.pad(a, widths)


def _pick_tile(dim):
    # dim is a multiple of 128; prefer the largest 128-multiple tile <= 512.
    for t in (512, 256, 128):
        if dim % t == 0:
            return t
    return dim


@jax.jit
def residual_linear_block(x, weight, bias, gamma, beta):
    """x: [N, F], weight: [F_out, F_in] (torch layout), bias/gamma/beta: [F]."""
    n, f = x.shape
    assert weight.shape == (f, f), "residual add requires in_features == out_features"

    # Lane-dense feature dim: pad to a multiple of 128 with zeros.
    # Zero padding keeps the math exact (zero weight rows/cols, zero bias/gamma
    # give zero outputs in the padded columns, which are sliced off below).
    f_pad = ((f + LANE - 1) // LANE) * LANE
    xp = _pad_to(x, f_pad, 1)
    wp = _pad_to(_pad_to(weight, f_pad, 0), f_pad, 1)
    bp = _pad_to(bias, f_pad, 0).reshape(1, f_pad)
    gp = _pad_to(gamma, f_pad, 0).reshape(1, f_pad)
    bep = _pad_to(beta, f_pad, 0).reshape(1, f_pad)

    tn = _pick_tile(f_pad)   # output-feature tile (lane axis, 128-multiple)
    tk = _pick_tile(f_pad)   # contraction tile
    nj, nk = f_pad // tn, f_pad // tk

    itemsize = jnp.dtype(x.dtype).itemsize
    cost = pl.CostEstimate(
        flops=2 * n * f_pad * f_pad,
        transcendentals=f_pad,                         # rsqrt per feature column
        bytes_accessed=(2 * n * f_pad + f_pad * f_pad + n * f_pad) * itemsize
                       + 3 * f_pad * 4,
    )

    out = pl.pallas_call(
        residual_linear_block_kernel,
        out_shape=jax.ShapeDtypeStruct((n, f_pad), x.dtype),
        grid=(nj, nk),                                 # reduction axis (k) last
        in_specs=[
            pl.BlockSpec((n, tk), lambda j, k: (0, k)),    # x  (K slices for matmul)
            pl.BlockSpec((tn, tk), lambda j, k: (j, k)),   # W  (torch layout)
            pl.BlockSpec((n, tn), lambda j, k: (0, j)),    # x  (residual slice)
            pl.BlockSpec((1, tn), lambda j, k: (0, j)),    # bias
            pl.BlockSpec((1, tn), lambda j, k: (0, j)),    # gamma
            pl.BlockSpec((1, tn), lambda j, k: (0, j)),    # beta
        ],
        out_specs=pl.BlockSpec((n, tn), lambda j, k: (0, j)),
        scratch_shapes=[pltpu.VMEM((n, tn), jnp.float32)],
        compiler_params=pltpu.CompilerParams(
            dimension_semantics=("parallel", "arbitrary")),
        cost_estimate=cost,
    )(xp, wp, xp, bp, gp, bep)

    return out[:, :f]


def reference(x, weight, bias, gamma, beta):
    h = x @ weight.T + bias
    h = h + x
    h = jnp.where(h >= 0, h, NEG_SLOPE * h)
    mean = h.mean(axis=0)
    var = ((h - mean) ** 2).mean(axis=0)
    return gamma * (h - mean) / jnp.sqrt(var + BN_EPS) + beta


if __name__ == "__main__":
    N, F = 8, 32  # batch, features (in_features == out_features for the residual)

    key = jax.random.PRNGKey(0)
    kx, kw, kb = jax.random.split(key, 3)

    x = jax.random.normal(kx, (N, F), dtype=jnp.float32)
    # Parameter shapes follow nn.Linear / nn.BatchNorm1d defaults.
    bound = 1.0 / jnp.sqrt(F)
    weight = jax.random.uniform(kw, (F, F), minval=-bound, maxval=bound,
                                dtype=jnp.float32)
    bias = jax.random.uniform(kb, (F,), minval=-bound, maxval=bound,
                              dtype=jnp.float32)
    gamma = jnp.ones((F,), dtype=jnp.float32)   # BatchNorm weight
    beta = jnp.zeros((F,), dtype=jnp.float32)   # BatchNorm bias

    out = residual_linear_block(x, weight, bias, gamma, beta)
    out = jax.block_until_ready(out)

    ref = reference(x, weight, bias, gamma, beta)
    assert out.shape == (N, F)
    assert jnp.allclose(out, ref, atol=1e-4, rtol=1e-4), \
        f"max err {jnp.max(jnp.abs(out - ref))}"

    # TODO(synk): BatchNorm running_mean/running_var momentum updates (a
    # training-time side effect, not part of the forward output) are not emitted.
    print("KERNEL_OK")
</pallas_src>

<mosaic_0001>
module attributes {stable_mosaic.version = 11 : i64} {
  func.func @residual_linear_block_kernel(%arg0: i32, %arg1: i32, %arg2: memref<8x128xf32, #tpu.memory_space<vmem>>, %arg3: memref<128x128xf32, #tpu.memory_space<vmem>>, %arg4: memref<8x128xf32, #tpu.memory_space<vmem>>, %arg5: memref<1x128xf32, #tpu.memory_space<vmem>>, %arg6: memref<1x128xf32, #tpu.memory_space<vmem>>, %arg7: memref<1x128xf32, #tpu.memory_space<vmem>>, %arg8: memref<8x128xf32, #tpu.memory_space<vmem>>, %arg9: memref<8x128xf32, #tpu.memory_space<vmem>>) attributes {dimension_semantics = [#tpu.dimension_semantics<parallel>, #tpu.dimension_semantics<arbitrary>], iteration_bounds = array<i64: 1, 1>, scalar_prefetch = 0 : i64, scratch_operands = 1 : i64, tpu.core_type = #tpu.core_type<tc>, window_params = [{transform_indices = @transform_0, window_bounds = array<i64: 8, 128>}, {transform_indices = @transform_1, window_bounds = array<i64: 128, 128>}, {transform_indices = @transform_2, window_bounds = array<i64: 8, 128>}, {transform_indices = @transform_3, window_bounds = array<i64: 1, 128>}, {transform_indices = @transform_4, window_bounds = array<i64: 1, 128>}, {transform_indices = @transform_5, window_bounds = array<i64: 1, 128>}, {transform_indices = @transform_6, window_bounds = array<i64: 8, 128>}]} {
    %c0_i32 = arith.constant 0 : i32
    %0 = arith.cmpi eq, %arg1, %c0_i32 : i32
    %1 = arith.extui %0 : i1 to i32
    %c0_i32_0 = arith.constant 0 : i32
    %2 = arith.cmpi ne, %1, %c0_i32_0 : i32
    scf.if %2 {
      %c0_10 = arith.constant 0 : index
      %c0_11 = arith.constant 0 : index
      %12 = vector.load %arg4[%c0_10, %c0_11] : memref<8x128xf32, #tpu.memory_space<vmem>>, vector<8x128xf32>
      %c0_12 = arith.constant 0 : index
      %c0_13 = arith.constant 0 : index
      %13 = vector.load %arg5[%c0_12, %c0_13] : memref<1x128xf32, #tpu.memory_space<vmem>>, vector<1x128xf32>
      %14 = vector.broadcast %13 : vector<1x128xf32> to vector<8x128xf32>
      %15 = arith.addf %12, %14 : vector<8x128xf32>
      %c0_14 = arith.constant 0 : index
      %c0_15 = arith.constant 0 : index
      %16 = vector.load %arg9[%c0_14, %c0_15] : memref<8x128xf32, #tpu.memory_space<vmem>>, vector<8x128xf32>
      tpu.vector_store %arg9[%c0_14, %c0_15], %15 {strides = array<i32>} : memref<8x128xf32, #tpu.memory_space<vmem>>, vector<8x128xf32>,
    } else {
    }
    %c0 = arith.constant 0 : index
    %c0_1 = arith.constant 0 : index
    %3 = vector.load %arg9[%c0, %c0_1] : memref<8x128xf32, #tpu.memory_space<vmem>>, vector<8x128xf32>
    %c0_2 = arith.constant 0 : index
    %c0_3 = arith.constant 0 : index
    %4 = vector.load %arg2[%c0_2, %c0_3] : memref<8x128xf32, #tpu.memory_space<vmem>>, vector<8x128xf32>
    %c0_4 = arith.constant 0 : index
    %c0_5 = arith.constant 0 : index
    %5 = vector.load %arg3[%c0_4, %c0_5] : memref<128x128xf32, #tpu.memory_space<vmem>>, vector<128x128xf32>
    %cst = arith.constant dense<0.000000e+00> : vector<8x128xf32>
    %6 = tpu.matmul %4, %5, %cst {dimension_numbers = #tpu.dot_dimension_numbers<[1], [1], [0], [0], [0, 0, 1, 0], [], []>} : vector<8x128xf32>, vector<128x128xf32>, vector<8x128xf32> -> vector<8x128xf32>
    %7 = arith.addf %3, %6 : vector<8x128xf32>
    %c0_6 = arith.constant 0 : index
    %c0_7 = arith.constant 0 : index
    %8 = vector.load %arg9[%c0_6, %c0_7] : memref<8x128xf32, #tpu.memory_space<vmem>>, vector<8x128xf32>
    tpu.vector_store %arg9[%c0_6, %c0_7], %7 {strides = array<i32>} : memref<8x128xf32, #tpu.memory_space<vmem>>, vector<8x128xf32>,
    %c0_i32_8 = arith.constant 0 : i32
    %9 = arith.cmpi eq, %arg1, %c0_i32_8 : i32
    %10 = arith.extui %9 : i1 to i32
    %c0_i32_9 = arith.constant 0 : i32
    %11 = arith.cmpi ne, %10, %c0_i32_9 : i32
    scf.if %11 {
      %c0_10 = arith.constant 0 : index
      %c0_11 = arith.constant 0 : index
      %12 = vector.load %arg9[%c0_10, %c0_11] : memref<8x128xf32, #tpu.memory_space<vmem>>, vector<8x128xf32>
      %cst_12 = arith.constant 0.00999999977 : f32
      %13 = vector.broadcast %cst_12 : f32 to vector<8x128xf32>
      %14 = arith.mulf %13, %12 : vector<8x128xf32>
      %15 = arith.maximumf %12, %14 : vector<8x128xf32>
      %cst_13 = arith.constant dense<0.000000e+00> : vector<128xf32>
      %16 = vector.multi_reduction <add>, %15, %cst_13 [0] : vector<8x128xf32> to vector<128xf32>
      %17 = vector.shape_cast %16 : vector<128xf32> to vector<1x128xf32>
      %cst_14 = arith.constant 1.250000e-01 : f32
      %18 = vector.broadcast %cst_14 : f32 to vector<1x128xf32>
      %19 = arith.mulf %17, %18 : vector<1x128xf32>
      %20 = arith.mulf %15, %15 : vector<8x128xf32>
      %cst_15 = arith.constant dense<0.000000e+00> : vector<128xf32>
      %21 = vector.multi_reduction <add>, %20, %cst_15 [0] : vector<8x128xf32> to vector<128xf32>
      %22 = vector.shape_cast %21 : vector<128xf32> to vector<1x128xf32>
      %cst_16 = arith.constant 1.250000e-01 : f32
      %23 = vector.broadcast %cst_16 : f32 to vector<1x128xf32>
      %24 = arith.mulf %22, %23 : vector<1x128xf32>
      %25 = arith.mulf %19, %19 : vector<1x128xf32>
      %26 = arith.subf %24, %25 : vector<1x128xf32>
      %cst_17 = arith.constant 9.99999974E-6 : f32
      %27 = vector.broadcast %cst_17 : f32 to vector<1x128xf32>
      %28 = arith.addf %26, %27 : vector<1x128xf32>
      %29 = math.rsqrt %28 : vector<1x128xf32>
      %c0_18 = arith.constant 0 : index
      %c0_19 = arith.constant 0 : index
      %30 = vector.load %arg6[%c0_18, %c0_19] : memref<1x128xf32, #tpu.memory_space<vmem>>, vector<1x128xf32>
      %31 = arith.mulf %30, %29 : vector<1x128xf32>
      %c0_20 = arith.constant 0 : index
      %c0_21 = arith.constant 0 : index
      %32 = vector.load %arg7[%c0_20, %c0_21] : memref<1x128xf32, #tpu.memory_space<vmem>>, vector<1x128xf32>
      %33 = arith.mulf %19, %31 : vector<1x128xf32>
      %34 = arith.subf %32, %33 : vector<1x128xf32>
      %35 = vector.broadcast %31 : vector<1x128xf32> to vector<8x128xf32>
      %36 = arith.mulf %15, %35 : vector<8x128xf32>
      %37 = vector.broadcast %34 : vector<1x128xf32> to vector<8x128xf32>
      %38 = arith.addf %36, %37 : vector<8x128xf32>
      %c0_22 = arith.constant 0 : index
      %c0_23 = arith.constant 0 : index
      %39 = vector.load %arg8[%c0_22, %c0_23] : memref<8x128xf32, #tpu.memory_space<vmem>>, vector<8x128xf32>
      tpu.vector_store %arg8[%c0_22, %c0_23], %38 {strides = array<i32>} : memref<8x128xf32, #tpu.memory_space<vmem>>, vector<8x128xf32>,
    } else {
    }
    return
  }
  func.func @transform_0(%arg0: i32, %arg1: i32) -> (i32, i32) {
    %c0_i32 = arith.constant 0 : i32
    %c0_i32_0 = arith.constant 0 : i32
    return %c0_i32, %arg1 : i32, i32
  }
  func.func @transform_1(%arg0: i32, %arg1: i32) -> (i32, i32) {
    %c0_i32 = arith.constant 0 : i32
    return %arg0, %arg1 : i32, i32
  }
  func.func @transform_2(%arg0: i32, %arg1: i32) -> (i32, i32) {
    %c0_i32 = arith.constant 0 : i32
    %c0_i32_0 = arith.constant 0 : i32
    return %c0_i32, %arg0 : i32, i32
  }
  func.func @transform_3(%arg0: i32, %arg1: i32) -> (i32, i32) {
    %c0_i32 = arith.constant 0 : i32
    %c0_i32_0 = arith.constant 0 : i32
    return %c0_i32, %arg0 : i32, i32
  }
  func.func @transform_4(%arg0: i32, %arg1: i32) -> (i32, i32) {
    %c0_i32 = arith.constant 0 : i32
    %c0_i32_0 = arith.constant 0 : i32
    return %c0_i32, %arg0 : i32, i32
  }
  func.func @transform_5(%arg0: i32, %arg1: i32) -> (i32, i32) {
    %c0_i32 = arith.constant 0 : i32
    %c0_i32_0 = arith.constant 0 : i32
    return %c0_i32, %arg0 : i32, i32
  }
  func.func @transform_6(%arg0: i32, %arg1: i32) -> (i32, i32) {
    %c0_i32 = arith.constant 0 : i32
    %c0_i32_0 = arith.constant 0 : i32
    return %c0_i32, %arg0 : i32, i32
  }
}

</mosaic_0001>

<bundles_post_ra>
// kernel: residual_linear_block.1
= control target key start
LH: loop header
LB: loop body
LE: loop exit
PB: predicated region body
PF: predicated region fallthrough
CT: control target
= control target key end

     0   :  { %v267_v1 = vmov 0.0   ;;  %vm268_vm0 = vmmov 0   ;;  %s371_s0 = inlined_call_operand.vmem [shape: f32[8,128], index: 0, kind: input, shape index: {}, may-alias: {0,2}]   ;;  %s372_s1 = inlined_call_operand.vmem [shape: f32[128,128], index: 1, kind: input, shape index: {}]   ;;  %s373_s2 = inlined_call_operand.vmem [shape: f32[8,128], index: 2, kind: input, shape index: {}, may-alias: {0,2}]   ;;  %s374_s3 = inlined_call_operand.vmem [shape: f32[1,128], index: 3, kind: input, shape index: {}]   ;;  %s375_s4 = inlined_call_operand.vmem [shape: f32[1,128], index: 4, kind: input, shape index: {}]   ;;  %s376_s5 = inlined_call_operand.vmem [shape: f32[1,128], index: 5, kind: input, shape index: {}]   ;;  %s377_s6 = inlined_call_operand.hbm [shape: f32[8,128], index: 6, kind: output, shape index: {}]  }
   0x1   :  { %v55_v0 = vld [vmem:[%s372_s1 + $0x78] sm:$0xff]  ;;  %205 = vmatprep.subr.mxu0 %v267_v1  ;;  %237 = vmatprep.mubr.msk.f32.mxu0 %vm268_vm0, %v267_v1  ;;  %v54_v2 = vld [vmem:[%s372_s1 + $0x70] sm:$0xff] }
   0x2   :  { %206 = vmatpush3.xpose.msra.mxu0 %v55_v0 }
   0x3   :  { %207 = vmatprep.subr.mxu0 %v267_v1 }
   0x6   :  { %208 = vmatpush3.xpose.msra.mxu0 %v54_v2 }
   0x7   :  { %11 = vsyncpa [#allocation4], 0  ;;  %209 = vmatprep.subr.mxu0 %v267_v1  ;;  %v53_v3 = vld [vmem:[%s372_s1 + $0x68] sm:$0xff]  ;;  %v52_v4 = vld [vmem:[%s372_s1 + $0x60] sm:$0xff]  ;;  %v159_v44 = vlaneseq  ;;  %s269_s11 = smov [#allocation3]  }
   0x8   :  { %v51_v5 = vld [vmem:[%s372_s1 + $0x58] sm:$0xff]  ;;  %v50_v6 = vld [vmem:[%s372_s1 + $0x50] sm:$0xff]  ;;  %v49_v7 = vld [vmem:[%s372_s1 + $0x48] sm:$0xff]  ;;  %s179_s12 = sshll.u32 %s269_s11, 4  ;;  %s180_s12 = int_to_ptr.vmem [resolvable:$true] %s179_s12 }
   0x9   :  { %v48_v8 = vld [vmem:[%s372_s1 + $0x40] sm:$0xff]  ;;  %v47_v9 = vld [vmem:[%s372_s1 + $0x38] sm:$0xff]  ;;  %v46_v10 = vld [vmem:[%s372_s1 + $0x30] sm:$0xff]  ;;  %v160_v45 = vshrl.u32 %v159_v44, 7  ;;  %s245_s13 = scalar_lea.vmem %s180_s12, 128  ;;  %p250_p1 = scmp.lt.s32.totalorder %s180_s12, %s180_s12 }
   0xa   :  { %210 = vmatpush3.xpose.msra.mxu0 %v53_v3  ;;  %v45_v11 = vld [vmem:[%s372_s1 + $0x28] sm:$0xff]  ;;  %v44_v12 = vld [vmem:[%s372_s1 + $0x20] sm:$0xff]  ;;  %v43_v13 = vld [vmem:[%s372_s1 + $0x18] sm:$0xff]  ;;  %p246_p0 = scmp.ne.s32.totalorder %s180_s12, %s245_s13  ;;  %p251_p2 = scmp.lt.s32.totalorder %s245_s13, %s245_s13 }
   0xb   :  { %211 = vmatprep.subr.mxu0 %v267_v1  ;;  %v42_v14 = vld [vmem:[%s372_s1 + $0x10] sm:$0xff]  ;;  %v41_v15 = vld [vmem:[%s372_s1 + $0x8] sm:$0xff]  ;;  %v40_v16 = vld [vmem:[%s372_s1] sm:$0xff]  ;;  %v161_v47 = vsub.s32 0, %v160_v45 }
   0xc   :  { %v39_v17 = vld [vmem:[%s371_s0] sm:$0xff]  ;;  %p252_p3 = por %p251_p2, %p250_p1 }
   0xd   :  { %v28_v18 = vld [vmem:[%s373_s2] sm:$0xff] }
   0xe   :  { %212 = vmatpush3.xpose.msra.mxu0 %v52_v4  ;;  %v187_v19 = vld [vmem:[%s374_s3] ss:$0 sm:$0xff]  ;;  %p253_p4 = pnand %p252_p3, %p246_p0 }
   0xf   :  { %213 = vmatprep.subr.mxu0 %v267_v1  ;;  %v36_v20 = vadd.f32 %v187_v19, %v28_v18  ;;  %v153_v46 = vld [vmem:[%s375_s4] sm:$0x1] }
  0x10   :  { %v155_v50 = vld [vmem:[%s376_s5] sm:$0x1] }
  0x12   :  { %214 = vmatpush3.xpose.msra.mxu0 %v51_v5 }
  0x13   :  { %215 = vmatprep.subr.mxu0 %v267_v1 }
  0x16   :  { %216 = vmatpush3.xpose.msra.mxu0 %v50_v6 }
  0x17   :  { %217 = vmatprep.subr.mxu0 %v267_v1 }
  0x1a   :  { %218 = vmatpush3.xpose.msra.mxu0 %v49_v7 }
  0x1b   :  { %219 = vmatprep.subr.mxu0 %v267_v1 }
  0x1e   :  { %220 = vmatpush3.xpose.msra.mxu0 %v48_v8 }
  0x1f   :  { %221 = vmatprep.subr.mxu0 %v267_v1 }
  0x22   :  { %222 = vmatpush3.xpose.msra.mxu0 %v47_v9 }
  0x23   :  { %223 = vmatprep.subr.mxu0 %v267_v1 }
  0x26   :  { %224 = vmatpush3.xpose.msra.mxu0 %v46_v10 }
  0x27   :  { %225 = vmatprep.subr.mxu0 %v267_v1 }
  0x2a   :  { %226 = vmatpush3.xpose.msra.mxu0 %v45_v11 }
  0x2b   :  { %227 = vmatprep.subr.mxu0 %v267_v1 }
  0x2e   :  { %228 = vmatpush3.xpose.msra.mxu0 %v44_v12 }
  0x2f   :  { %229 = vmatprep.subr.mxu0 %v267_v1 }
  0x32   :  { %230 = vmatpush3.xpose.msra.mxu0 %v43_v13 }
  0x33   :  { %231 = vmatprep.subr.mxu0 %v267_v1 }
  0x36   :  { %232 = vmatpush3.xpose.msra.mxu0 %v42_v14 }
  0x37   :  { %233 = vmatprep.subr.mxu0 %v267_v1 }
  0x3a   :  { %234 = vmatpush3.xpose.msra.mxu0 %v41_v15 }
  0x3b   :  { %235 = vmatprep.subr.mxu0 %v267_v1 }
  0x3e   :  { %236 = vmatpush3.xpose.msra.mxu0 %v40_v16 }
  0x41   :  { %238 = vmatmul.mubr.f32.vlgmr.msra.gmra.mxu0 %v39_v17 }
 0x101   :  { %v122_v21 = vpop.f32.mrf.mxu0 }
 0x102   :  { %v126_v22 = vadd.f32 %v122_v21, %v36_v20 }
 0x103   :  { %v239_v23 = vpop.f32.mrf.mxu0 }
 0x104   :  { %v132_v24 = vmul.f32 0.01, %v126_v22 }
 0x106   :  { %v133_v25 = vmax.f32 %v126_v22, %v132_v24 }
 0x108   :  { %v134_v26 = vrot.slane %v133_v25, 4  ;;  %v141_v27 = vmul.f32 %v133_v25, %v133_v25 }
 0x10a   :  { %v135_v28 = vadd.f32 %v134_v26, %v133_v25  ;;  %v142_v29 = vrot.slane %v141_v27, 4 }
 0x10c   :  { %v136_v30 = vrot.slane %v135_v28, 2  ;;  %v143_v31 = vadd.f32 %v142_v29, %v141_v27 }
 0x10e   :  { %v137_v32 = vadd.f32 %v136_v30, %v135_v28  ;;  %v144_v33 = vrot.slane %v143_v31, 2 }
 0x110   :  { %v145_v34 = vadd.f32 %v144_v33, %v143_v31  ;;  %v138_v35 = vrot.slane %v137_v32, 1 }
 0x112   :  { %v146_v36 = vrot.slane %v145_v34, 1  ;;  %v139_v37 = vadd.f32 %v138_v35, %v137_v32 }
 0x114   :  { %v147_v38 = vadd.f32 %v146_v36, %v145_v34  ;;  %v140_v39 = vmul.f32 0.125, %v139_v37 }
 0x116   :  { %v148_v40 = vmul.f32 0.125, %v147_v38  ;;  %v149_v41 = vmul.f32 %v140_v39, %v140_v39 }
 0x118   :  { %v150_v42 = vsub.f32 %v148_v40, %v149_v41 }
 0x11a   :  { %v151_v43 = vadd.f32 1e-05, %v150_v42 }
 0x11c   :  { %243 = vrsqrt.f32 %v151_v43 }
 0x129   :  { %v244_v48 = vpop.eup %243 }
 0x12a   :  { %v154_v49 = vmul.f32 %v244_v48, %v153_v46 }
 0x12c   :  { %v156_v51 = vmul.f32 %v154_v49, %v140_v39  ;;  %v162_v52 = vrot.slane %v154_v49, %v161_v47 }
 0x12e   :  { %v157_v53 = vsub.f32 %v155_v50, %v156_v51  ;;  %v164_v54 = vmul.f32 %v162_v52, %v133_v25 }
 0x130   :  { %v169_v55 = vrot.slane %v157_v53, %v161_v47 }
 0x132   :  { %v171_v56 = vadd.f32 %v169_v55, %v164_v54 }
 0x134   :  { %172 = vst [vmem:[#allocation3] sm:$0xff] %v171_v56 }
 0x135   :  { %256 = shalt.err (!%p253_p4)
}
 0x136   :  { %182 = dma.vmem_to_hbm [thread:$0]  %s180_s12, 128, %s377_s6, [#allocation4]  }
 0x137   :  { %265 = dma.done.wait [#allocation4], 128  }
 0x138   :  { %266 = vsyncadd [#allocation4], 4294967168 }
 0x139   :  { %186 = vsyncpa [#allocation4], 1 }

</bundles_post_ra>
